<compile_context>
chip_gen: v7x
topology: tpu7x:2x2x1
jax: 0.10.0
libtpu: 0.0.40
codegen_flags: <defaults>
</compile_context>

<pallas_src>
import functools

import jax
import jax.numpy as jnp
from jax.experimental import pallas as pl
from jax.experimental.pallas import tpu as pltpu


# ----------------------------- module helpers ------------------------------

def gn_groups(proposed, channels, max_groups=8, verbose=False):
    """Same semantics as the PyTorch helper (printing suppressed by default)."""
    if channels % proposed == 0:
        return proposed
    for candidate in range(proposed, channels):
        if channels % candidate == 0:
            if verbose:
                print(f"gn_groups: rounded proposed={proposed} up to "
                      f"{candidate} for channels={channels}")
            return candidate
    if verbose:
        print(f"gn_groups: no valid divisor found for proposed={proposed}, "
              f"channels={channels}, falling back to LayerNorm behavior")
    return 1


# ------------------------------ Pallas kernel -------------------------------

def _group_norm_kernel(x_ref, g_ref, b_ref, o_ref, *, eps, rb, true_cols):
    """One GroupNorm group per row.

    Block layouts:
      x_ref/o_ref : (TR, cols_p) in the activation's native dtype
      g_ref/b_ref : (Gb, cols_p) f32, Gb = min(TR, G); TR = rb * Gb
    The kernel processes the block in chunks of `m` gamma-slabs so that each
    chunk fills >= 8 sublanes when the group count per block is small.
    """
    Gb, cols_p = g_ref.shape
    g = g_ref[...]
    b = b_ref[...]

    # Group slabs so a processed chunk fills the sublanes when Gb < 8.
    m = 1
    if Gb < 8 and rb > 1:
        m = rb
        for cand in range(1, rb + 1):
            if rb % cand == 0 and cand * Gb >= 8:
                m = cand
                break
    if m > 1:
        if Gb == 1:
            g = jnp.broadcast_to(g, (m, cols_p))
            b = jnp.broadcast_to(b, (m, cols_p))
        else:
            g = jnp.tile(g, (m, 1))
            b = jnp.tile(b, (m, 1))
    chunk = m * Gb

    need_mask = cols_p != true_cols
    inv_n = jnp.float32(1.0 / true_cols)

    for c in range(rb // m):                      # small static unroll
        r0 = c * chunk
        x = x_ref[r0:r0 + chunk, :].astype(jnp.float32)   # cast in-kernel
        if need_mask:
            lane = jax.lax.broadcasted_iota(jnp.int32, x.shape, 1)
            valid = lane < true_cols
            xs = jnp.where(valid, x, 0.0)
        else:
            xs = x
        mean = jnp.sum(xs, axis=-1, keepdims=True) * inv_n     # lane reduce
        xc = x - mean
        xcm = jnp.where(valid, xc, 0.0) if need_mask else xc
        var = jnp.sum(xcm * xcm, axis=-1, keepdims=True) * inv_n
        inv = jax.lax.rsqrt(var + eps)                          # EUP
        o_ref[r0:r0 + chunk, :] = (xc * inv * g + b).astype(o_ref.dtype)


# ------------------------------ block picker --------------------------------

def _pick_rows_per_block(BG, G, cols, itemsize,
                         footprint_budget=12 << 20, min_steps=2):
    """Pick TR (rows per block) for the (BG, cols) layout.

    Candidates are either whole-batch multiples of G (TR = rb*G) or divisors
    of G (sub-group blocks for small batch), subject to the (8,128) sublane
    rule.  The budget covers the FULL per-step footprint: x + out blocks
    double-buffered plus the (<= G rows) affine maps.  Prefer a grid with at
    least `min_steps` steps (megacore sharding on v7x, pipelining elsewhere),
    then the largest block that fits the budget.
    """
    B = BG // G
    cands = set()
    for rbb in range(1, B + 1):
        if B % rbb == 0:
            cands.add(rbb * G)
    for d in range(1, G + 1):
        if G % d == 0:
            cands.add(d)
    valid = sorted(t for t in cands if (t % 8 == 0 or t == BG) and BG % t == 0)
    if not valid:
        valid = [BG]

    def footprint(tr):
        act = tr * cols * itemsize            # one x (or out) block
        aff = min(tr, G) * cols * 4           # one affine map block (f32)
        return 4 * act + 2 * aff              # x,out double-buffered; g,b once

    within = [t for t in valid if footprint(t) <= footprint_budget]
    if not within:
        # TODO(synk): column-tiled two-pass variant (stats pass + normalize
        # pass) for configs where one row-group exceeds the VMEM budget.
        return valid[0]
    pref = [t for t in within if BG // t >= min_steps]
    return max(pref) if pref else max(within)


# --------------------------------- wrapper -----------------------------------

def group_norm(x, gamma, beta, num_groups, eps=1e-6):
    """GroupNorm (affine) on NCHW input via a lane-dense 2-D Pallas kernel."""
    B, C, H, W = x.shape
    G = num_groups
    assert C % G == 0, (C, G)
    Cg = C // G
    HW = H * W
    cols = Cg * HW
    BG = B * G

    # Lane-dense 2-D view in the NATIVE dtype (row r = (b, g), col = cg*HW+hw).
    x2 = x.reshape(BG, cols)

    # Pad cols to a lane multiple so stores are unmasked (mean/var use true count).
    cols_p = ((cols + 127) // 128) * 128
    if cols_p != cols:
        x2 = jnp.pad(x2, ((0, 0), (0, cols_p - cols)))

    # Tiny per-group affine map, (G, cols_p) f32 — never activation-sized.
    g2 = jnp.broadcast_to(gamma.astype(jnp.float32).reshape(G, Cg, 1),
                          (G, Cg, HW)).reshape(G, cols)
    b2 = jnp.broadcast_to(beta.astype(jnp.float32).reshape(G, Cg, 1),
                          (G, Cg, HW)).reshape(G, cols)
    if cols_p != cols:
        g2 = jnp.pad(g2, ((0, 0), (0, cols_p - cols)))
        b2 = jnp.pad(b2, ((0, 0), (0, cols_p - cols)))

    itemsize = jnp.dtype(x.dtype).itemsize
    TR = _pick_rows_per_block(BG, G, cols_p, itemsize)
    Gb = min(TR, G)            # affine-map rows per block
    rb = max(1, TR // G)       # whole batches per block (1 if sub-group blocks)
    gsteps = G // Gb           # how many blocks tile the (G, cols) affine map

    if gsteps == 1:
        # Constant block index: single-buffer the affine operands.
        aff_spec = pl.BlockSpec((Gb, cols_p), lambda i: (0, 0),
                                pipeline_mode=pl.Buffered(1))
    else:
        aff_spec = pl.BlockSpec((Gb, cols_p), lambda i: (i % gsteps, 0))

    flops = 7 * BG * cols
    bytes_accessed = 2 * BG * cols_p * itemsize + 2 * G * cols_p * 4

    out = pl.pallas_call(
        functools.partial(_group_norm_kernel, eps=eps, rb=rb, true_cols=cols),
        out_shape=jax.ShapeDtypeStruct((BG, cols_p), x.dtype),
        grid=(BG // TR,),
        in_specs=[
            pl.BlockSpec((TR, cols_p), lambda i: (i, 0)),   # activations
            aff_spec,                                       # gamma map
            aff_spec,                                       # beta map
        ],
        out_specs=pl.BlockSpec((TR, cols_p), lambda i: (i, 0)),
        compiler_params=pltpu.CompilerParams(
            dimension_semantics=("parallel",),
            vmem_limit_bytes=32 << 20),
        cost_estimate=pl.CostEstimate(
            flops=flops, transcendentals=BG, bytes_accessed=bytes_accessed),
    )(x2, g2, b2)

    if cols_p != cols:
        out = out[:, :cols]
    return out.reshape(B, C, H, W)


def normalize_forward(x, gamma, beta, num_groups=32, eps=1e-6):
    """Forward of the `Normalize` module."""
    C = x.shape[1]
    G = gn_groups(num_groups, C, verbose=False)
    return group_norm(x, gamma, beta, G, eps=eps)


# ------------------------------ pure-JAX reference ---------------------------

def _group_norm_reference(x, gamma, beta, G, eps):
    B, C, H, W = x.shape
    xr = x.reshape(B, G, -1).astype(jnp.float32)
    mean = xr.mean(-1, keepdims=True)
    var = jnp.mean((xr - mean) ** 2, -1, keepdims=True)
    y = ((xr - mean) * jax.lax.rsqrt(var + eps)).reshape(B, C, H, W)
    return y * gamma.reshape(1, C, 1, 1) + beta.reshape(1, C, 1, 1)


# ---------------------------------- main -------------------------------------

if __name__ == "__main__":
    key = jax.random.PRNGKey(0)
    # (B, C, H, W, dtype, tol):
    #   C=4  -> gn_groups(32,4)=1 (LayerNorm-like fallback)
    #   C=32 -> 32 groups, multi-step parallel grid
    #   bf16 -> exercises native-dtype I/O with in-kernel f32 compute
    configs = [
        (2, 4, 16, 16, jnp.float32, 1e-4),
        (2, 32, 16, 16, jnp.float32, 1e-4),
        (2, 32, 16, 16, jnp.bfloat16, 5e-2),
    ]
    for (B, C, H, W, dt, tol) in configs:
        kx, kg, kb, key = jax.random.split(key, 4)
        x = jax.random.normal(kx, (B, C, H, W), jnp.float32).astype(dt)
        gamma = 1.0 + 0.1 * jax.random.normal(kg, (C,), jnp.float32)
        beta = 0.1 * jax.random.normal(kb, (C,), jnp.float32)

        y = normalize_forward(x, gamma, beta)
        y = jax.block_until_ready(y)

        G = gn_groups(32, C, verbose=False)
        y_ref = _group_norm_reference(x.astype(jnp.float32), gamma, beta, G, 1e-6)

        assert y.shape == x.shape, y.shape
        assert y.dtype == x.dtype, y.dtype
        yf = y.astype(jnp.float32)
        assert bool(jnp.isfinite(yf).all())
        err = float(jnp.max(jnp.abs(yf - y_ref)))
        assert err < tol, (dt, err)

    print("KERNEL_OK")
</pallas_src>

<mosaic_0001>
module attributes {stable_mosaic.version = 11 : i64} {
  func.func @_group_norm_kernel(%arg0: i32, %arg1: memref<2x1024xf32, #tpu.memory_space<vmem>>, %arg2: memref<1x1024xf32, #tpu.memory_space<vmem>>, %arg3: memref<1x1024xf32, #tpu.memory_space<vmem>>, %arg4: memref<2x1024xf32, #tpu.memory_space<vmem>>) attributes {dimension_semantics = [#tpu.dimension_semantics<parallel>], iteration_bounds = array<i64: 1>, scalar_prefetch = 0 : i64, scratch_operands = 0 : i64, tpu.core_type = #tpu.core_type<tc>, window_params = [{transform_indices = @transform_0, window_bounds = array<i64: 2, 1024>}, {pipeline_mode = #tpu.pipeline_mode<synchronous>, transform_indices = @transform_1, window_bounds = array<i64: 1, 1024>}, {pipeline_mode = #tpu.pipeline_mode<synchronous>, transform_indices = @transform_2, window_bounds = array<i64: 1, 1024>}, {transform_indices = @transform_3, window_bounds = array<i64: 2, 1024>}]} {
    %c0 = arith.constant 0 : index
    %c0_0 = arith.constant 0 : index
    %0 = vector.load %arg2[%c0, %c0_0] : memref<1x1024xf32, #tpu.memory_space<vmem>>, vector<1x1024xf32>
    %c0_1 = arith.constant 0 : index
    %c0_2 = arith.constant 0 : index
    %1 = vector.load %arg3[%c0_1, %c0_2] : memref<1x1024xf32, #tpu.memory_space<vmem>>, vector<1x1024xf32>
    %2 = vector.shape_cast %0 : vector<1x1024xf32> to vector<1x1024xf32>
    %3 = vector.broadcast %2 : vector<1x1024xf32> to vector<2x1024xf32>
    %4 = vector.shape_cast %1 : vector<1x1024xf32> to vector<1x1024xf32>
    %5 = vector.broadcast %4 : vector<1x1024xf32> to vector<2x1024xf32>
    %c0_3 = arith.constant 0 : index
    %c0_4 = arith.constant 0 : index
    %6 = vector.load %arg1[%c0_3, %c0_4] : memref<2x1024xf32, #tpu.memory_space<vmem>>, vector<2x1024xf32>
    %cst = arith.constant dense<0.000000e+00> : vector<2xf32>
    %7 = vector.multi_reduction <add>, %6, %cst [1] : vector<2x1024xf32> to vector<2xf32>
    %8 = vector.shape_cast %7 : vector<2xf32> to vector<2x1xf32>
    %cst_5 = arith.constant 9.765625E-4 : f32
    %9 = vector.broadcast %cst_5 : f32 to vector<2x1xf32>
    %10 = arith.mulf %8, %9 : vector<2x1xf32>
    %11 = vector.broadcast %10 : vector<2x1xf32> to vector<2x1024xf32>
    %12 = arith.subf %6, %11 : vector<2x1024xf32>
    %13 = arith.mulf %12, %12 : vector<2x1024xf32>
    %cst_6 = arith.constant dense<0.000000e+00> : vector<2xf32>
    %14 = vector.multi_reduction <add>, %13, %cst_6 [1] : vector<2x1024xf32> to vector<2xf32>
    %15 = vector.shape_cast %14 : vector<2xf32> to vector<2x1xf32>
    %cst_7 = arith.constant 9.765625E-4 : f32
    %16 = vector.broadcast %cst_7 : f32 to vector<2x1xf32>
    %17 = arith.mulf %15, %16 : vector<2x1xf32>
    %cst_8 = arith.constant 9.99999997E-7 : f32
    %18 = vector.broadcast %cst_8 : f32 to vector<2x1xf32>
    %19 = arith.addf %17, %18 : vector<2x1xf32>
    %20 = math.rsqrt %19 : vector<2x1xf32>
    %21 = vector.broadcast %20 : vector<2x1xf32> to vector<2x1024xf32>
    %22 = arith.mulf %12, %21 : vector<2x1024xf32>
    %23 = arith.mulf %22, %3 : vector<2x1024xf32>
    %24 = arith.addf %23, %5 : vector<2x1024xf32>
    %c0_9 = arith.constant 0 : index
    %c0_10 = arith.constant 0 : index
    %25 = vector.load %arg4[%c0_9, %c0_10] : memref<2x1024xf32, #tpu.memory_space<vmem>>, vector<2x1024xf32>
    tpu.vector_store %arg4[%c0_9, %c0_10], %24 {strides = array<i32>} : memref<2x1024xf32, #tpu.memory_space<vmem>>, vector<2x1024xf32>,
    return
  }
  func.func @transform_0(%arg0: i32) -> (i32, i32) {
    %c0_i32 = arith.constant 0 : i32
    %c0_i32_0 = arith.constant 0 : i32
    return %arg0, %c0_i32 : i32, i32
  }
  func.func @transform_1(%arg0: i32) -> (i32, i32) {
    %c0_i32 = arith.constant 0 : i32
    %c0_i32_0 = arith.constant 0 : i32
    %c0_i32_1 = arith.constant 0 : i32
    return %c0_i32, %c0_i32_0 : i32, i32
  }
  func.func @transform_2(%arg0: i32) -> (i32, i32) {
    %c0_i32 = arith.constant 0 : i32
    %c0_i32_0 = arith.constant 0 : i32
    %c0_i32_1 = arith.constant 0 : i32
    return %c0_i32, %c0_i32_0 : i32, i32
  }
  func.func @transform_3(%arg0: i32) -> (i32, i32) {
    %c0_i32 = arith.constant 0 : i32
    %c0_i32_0 = arith.constant 0 : i32
    return %arg0, %c0_i32 : i32, i32
  }
}

</mosaic_0001>

<bundles_post_ra>
// kernel: tpu_custom_call.1
= control target key start
LH: loop header
LB: loop body
LE: loop exit
PB: predicated region body
PF: predicated region fallthrough
CT: control target
= control target key end

     0   :  { %8 = vsyncpa [#allocation3], 0  ;;  %s603_s0 = inlined_call_operand.hbm [shape: f32[2,1024], index: 0, kind: input, shape index: {}]   ;;  %s604_s1 = inlined_call_operand.hbm [shape: f32[1,1024], index: 1, kind: input, shape index: {}]   ;;  %s605_s2 = inlined_call_operand.hbm [shape: f32[1,1024], index: 2, kind: input, shape index: {}]   ;;  %s606_s3 = inlined_call_operand.hbm [shape: f32[2,1024], index: 3, kind: output, shape index: {}]  }
   0x1   :  { %9 = vsyncpa [#allocation6], 0 }
   0x2   :  { %10 = vsyncpa [#allocation4], 0  ;;  %s469_s12 = smov [#allocation5]   ;;  %s470_s14 = smov [#allocation2]  }
   0x3   :  { %s27_s13 = sshll.u32 %s469_s12, 4  ;;  %s17_s15 = sshll.u32 %s470_s14, 4  ;;  %s28_s13 = int_to_ptr.vmem [resolvable:$true] %s27_s13  ;;  %s18_s15 = int_to_ptr.vmem [resolvable:$true] %s17_s15 }
   0x4   :  { %s375_s18 = scalar_lea.hbm %s604_s1, 128 }
   0x5   :  { %p376_p0 = scmp.ne.s32.totalorder %s604_s1, %s375_s18  ;;  %p379_p1 = scmp.lt.u32.totalorder %s375_s18, %s604_s1 }
   0x7   :  { %p381_p2 = pnand %p379_p1, %p376_p0 }
   0x9   :  { %384 = shalt.err (!%p381_p2)
}
   0xa   :  { %s385_s23 = scalar_lea.vmem %s28_s13, 128  ;;  %p390_p4 = scmp.lt.s32.totalorder %s28_s13, %s28_s13 }
   0xb   :  { %p386_p3 = scmp.ne.s32.totalorder %s28_s13, %s385_s23  ;;  %p391_p5 = scmp.lt.s32.totalorder %s385_s23, %s385_s23 }
   0xd   :  { %p392_p6 = por %p391_p5, %p390_p4 }
   0xf   :  { %p393_p7 = pnand %p392_p6, %p386_p3 }
  0x11   :  { %396 = shalt.err (!%p393_p7)
}
  0x12   :  { %30 = dma.hbm_to_vmem [thread:$0]  %s604_s1, 128, %s28_s13, [#allocation6]  }
  0x13   :  { %s397_s28 = scalar_lea.hbm %s603_s0, 256 }
  0x14   :  { %p398_p8 = scmp.ne.s32.totalorder %s603_s0, %s397_s28  ;;  %p401_p9 = scmp.lt.u32.totalorder %s397_s28, %s603_s0 }
  0x16   :  { %p403_p10 = pnand %p401_p9, %p398_p8 }
  0x18   :  { %406 = shalt.err (!%p403_p10)
}
  0x19   :  { %s407_s6 = scalar_lea.vmem %s18_s15, 256  ;;  %p412_p12 = scmp.lt.s32.totalorder %s18_s15, %s18_s15 }
  0x1a   :  { %p408_p11 = scmp.ne.s32.totalorder %s18_s15, %s407_s6  ;;  %p413_p13 = scmp.lt.s32.totalorder %s407_s6, %s407_s6 }
  0x1c   :  { %p414_p0 = por %p413_p13, %p412_p12 }
  0x1e   :  { %p415_p1 = pnand %p414_p0, %p408_p11 }
  0x20   :  { %418 = shalt.err (!%p415_p1)
}
  0x21   :  { %20 = dma.hbm_to_vmem [thread:$0]  %s603_s0, 256, %s18_s15, [#allocation3]  }
  0x22   :  { %s471_s8 = smov [#allocation7]   ;;  %s419_s12 = scalar_lea.hbm %s605_s2, 128 }
  0x23   :  { %s37_s9 = sshll.u32 %s471_s8, 4  ;;  %p420_p2 = scmp.ne.s32.totalorder %s605_s2, %s419_s12  ;;  %s38_s9 = int_to_ptr.vmem [resolvable:$true] %s37_s9 }
  0x24   :  { %p423_p3 = scmp.lt.u32.totalorder %s419_s12, %s605_s2 }
  0x26   :  { %p425_p4 = pnand %p423_p3, %p420_p2 }
  0x28   :  { %428 = shalt.err (!%p425_p4)
}
  0x29   :  { %s429_s18 = scalar_lea.vmem %s38_s9, 128  ;;  %p434_p6 = scmp.lt.s32.totalorder %s38_s9, %s38_s9 }
  0x2a   :  { %p430_p5 = scmp.ne.s32.totalorder %s38_s9, %s429_s18  ;;  %p435_p7 = scmp.lt.s32.totalorder %s429_s18, %s429_s18 }
  0x2c   :  { %p436_p8 = por %p435_p7, %p434_p6 }
  0x2e   :  { %p437_p9 = pnand %p436_p8, %p430_p5 }
  0x30   :  { %440 = shalt.err (!%p437_p9)
}
  0x31   :  { %40 = dma.hbm_to_vmem [thread:$0]  %s605_s2, 128, %s38_s9, [#allocation6]  }
  0x32   :  { %463 = dma.done.wait [#allocation3], 256  }
  0x33   :  { %464 = vsyncadd [#allocation3], 4294967040 }
  0x34   :  { %465 = dma.done.wait [#allocation6], 256  }
  0x35   :  { %466 = vsyncadd [#allocation6], 4294967040  ;;  %v53_v0 = vlaneseq  ;;  %v472_v1 = vmov 1983009808   ;;  %v118_v6 = vld [vmem:[#allocation2] sm:$0xff]  ;;  %v119_v7 = vld [vmem:[#allocation2 + $0x8] sm:$0xff] }
  0x36   :  { %v124_v2 = vunpack.c.l.s4 %v472_v1  ;;  %v122_v8 = vcombine.high %v118_v6, %v118_v6  ;;  %vm164_vm0 = vcmask 1041408   ;;  %v139_v12 = vcombine.high %v119_v7, %v119_v7  ;;  %s474_s2 = smov [#allocation8]  }
  0x37   :  { %v531_v3 = vshrl.u32 %v53_v0, 7  ;;  %v473_v33 = vmov 269488144   ;;  %s355_s19 = sshll.u32 %s474_s2, 4  ;;  %s356_s19 = int_to_ptr.vmem [resolvable:$true] %s355_s19 }
  0x38   :  { %v125_v4 = vunpack.c.0.s8 %v124_v2  ;;  %v185_v34 = vunpack.c.l.s4 %v473_v33  ;;  %s441_s20 = scalar_lea.vmem %s356_s19, 256  ;;  %p446_p11 = scmp.lt.s32.totalorder %s356_s19, %s356_s19 }
  0x39   :  { %p442_p10 = scmp.ne.s32.totalorder %s356_s19, %s441_s20  ;;  %p447_p12 = scmp.lt.s32.totalorder %s441_s20, %s441_s20 }
  0x3a   :  { %v534_v5 = vsub.s32 %v125_v4, %v531_v3  ;;  %v186_v35 = vunpack.c.0.s8 %v185_v34 }
  0x3b   :  { %p448_p13 = por %p447_p12, %p446_p11 }
  0x3c   :  { %v129_v9 = vrot.slane %v118_v6, %v534_v5  ;;  %v136_v10 = vrot.slane %v122_v8, %v534_v5  ;;  %v146_v13 = vrot.slane %v119_v7, %v534_v5  ;;  %v153_v19 = vrot.slane %v139_v12, %v534_v5 }
  0x3d   :  { %v549_v36 = vsub.s32 %v186_v35, %v531_v3  ;;  %v59_v8 = vsub.s32 1, %v531_v3  ;;  %v71_v12 = vsub.s32 4, %v531_v3  ;;  %p449_p0 = pnand %p448_p13, %p442_p10 }
  0x3e   :  { %v137_v11 = vcombine.high %v129_v9, %v129_v9  ;;  %v165_v14 = vsel %vm164_vm0, %v129_v9, 0.0  ;;  %v138_v15 = vcombine.high %v136_v10, %v136_v10  ;;  %v168_v17 = vsel %vm164_vm0, %v136_v10, 0.0  ;;  %v50_v9 = vld [vmem:[#allocation5] sm:$0xff] }
  0x3f   :  { %v154_v20 = vcombine.high %v146_v13, %v146_v13  ;;  %v172_v23 = vsel %vm164_vm0, %v146_v13, 0.0  ;;  %v155_v25 = vcombine.high %v153_v19, %v153_v19  ;;  %v176_v28 = vsel %vm164_vm0, %v153_v19, 0.0 }
  0x40   :  { %v166_v16 = vsel %vm164_vm0, %v137_v11, 0.0  ;;  %v170_v21 = vsel %vm164_vm0, %v138_v15, 0.0  ;;  %v63_v10 = vsub.s32 2, %v531_v3  ;;  %v67_v11 = vsub.s32 3, %v531_v3 }
  0x41   :  { %v167_v18 = vadd.f32 %v166_v16, %v165_v14  ;;  %v174_v26 = vsel %vm164_vm0, %v154_v20, 0.0  ;;  %v178_v30 = vsel %vm164_vm0, %v155_v25, 0.0  ;;  %v75_v14 = vsub.s32 5, %v531_v3 }
  0x42   :  { %v79_v15 = vsub.s32 6, %v531_v3  ;;  %v83_v16 = vsub.s32 7, %v531_v3  ;;  %v60_v20 = vrot.slane %v50_v9, %v59_v8 }
  0x43   :  { %v169_v22 = vadd.f32 %v168_v17, %v167_v18  ;;  %v51_v18 = vld [vmem:[#allocation7] sm:$0xff]  ;;  %v76_v25 = vrot.slane %v50_v9, %v75_v14 }
  0x44   :  { %v109_v33 = vrot.slane %v51_v18, %v75_v14  ;;  %v113_v34 = vrot.slane %v51_v18, %v79_v15 }
  0x45   :  { %v171_v24 = vadd.f32 %v170_v21, %v169_v22  ;;  %v64_v22 = vrot.slane %v50_v9, %v63_v10 }
  0x47   :  { %v173_v27 = vadd.f32 %v172_v23, %v171_v24  ;;  %v68_v23 = vrot.slane %v50_v9, %v67_v11  ;;  %v72_v24 = vrot.slane %v50_v9, %v71_v12 }
  0x49   :  { %v175_v29 = vadd.f32 %v174_v26, %v173_v27  ;;  %v80_v26 = vrot.slane %v50_v9, %v79_v15  ;;  %v84_v27 = vrot.slane %v50_v9, %v83_v16 }
  0x4b   :  { %v177_v31 = vadd.f32 %v176_v28, %v175_v29  ;;  %v93_v29 = vrot.slane %v51_v18, %v59_v8 }
  0x4d   :  { %v179_v32 = vadd.f32 %v178_v30, %v177_v31  ;;  %v97_v30 = vrot.slane %v51_v18, %v63_v10  ;;  %v101_v31 = vrot.slane %v51_v18, %v67_v11 }
  0x4f   :  { %180 = vadd.xlane.f32.xlu0 %v179_v32  ;;  %v105_v32 = vrot.slane %v51_v18, %v71_v12 }
  0xdc   :  { %v181_v37 = vpop.xlane.xlu0 %180 }
  0xdd   :  { %v182_v38 = vmul.f32 0.0009765625, %v181_v37  ;;  %v272_v37 = vcombine.low %v64_v22, %v68_v23 }
  0xdf   :  { %v190_v39 = vrot.slane %v182_v38, %v549_v36  ;;  %v288_v38 = vcombine.low %v72_v24, %v76_v25 }
  0xe1   :  { %v552_v40 = vsub.f32 %v118_v6, %v190_v39  ;;  %v554_v41 = vsub.f32 %v119_v7, %v190_v39  ;;  %v55_v7 = vsub.s32 0, %v531_v3  ;;  %v117_v3 = vrot.slane %v51_v18, %v83_v16 }
  0xe2   :  { %v289_v39 = vcombine.low %v80_v26, %v84_v27 }
  0xe3   :  { %v194_v42 = vmul.f32 %v552_v40, %v552_v40  ;;  %v195_v43 = vmul.f32 %v554_v41, %v554_v41  ;;  %v56_v19 = vrot.slane %v50_v9, %v55_v7  ;;  %v89_v28 = vrot.slane %v51_v18, %v55_v7 }
  0xe5   :  { %v198_v44 = vcombine.high %v194_v42, %v194_v42  ;;  %v205_v45 = vrot.slane %v194_v42, %v534_v5  ;;  %v222_v48 = vrot.slane %v195_v43, %v534_v5  ;;  %v215_v52 = vcombine.high %v195_v43, %v195_v43 }
  0xe6   :  { %v271_v35 = vcombine.low %v56_v19, %v60_v20  ;;  %v309_v42 = vcombine.low %v89_v28, %v93_v29  ;;  %v310_v43 = vcombine.low %v97_v30, %v101_v31 }
  0xe7   :  { %v212_v46 = vrot.slane %v198_v44, %v534_v5  ;;  %v213_v47 = vcombine.high %v205_v45, %v205_v45  ;;  %v240_v49 = vsel %vm164_vm0, %v205_v45, 0.0  ;;  %v229_v56 = vrot.slane %v215_v52, %v534_v5 }
  0xe8   :  { %v230_v57 = vcombine.high %v222_v48, %v222_v48  ;;  %v247_v60 = vsel %vm164_vm0, %v222_v48, 0.0  ;;  %v326_v44 = vcombine.low %v105_v32, %v109_v33  ;;  %v327_v45 = vcombine.low %v113_v34, %v117_v3 }
  0xe9   :  { %v241_v50 = vsel %vm164_vm0, %v213_v47, 0.0  ;;  %v214_v51 = vcombine.high %v212_v46, %v212_v46  ;;  %v243_v54 = vsel %vm164_vm0, %v212_v46, 0.0  ;;  %v231_v62 = vcombine.high %v229_v56, %v229_v56 }
  0xea   :  { %v242_v53 = vadd.f32 %v241_v50, %v240_v49  ;;  %v249_v63 = vsel %vm164_vm0, %v230_v57, 0.0  ;;  %v251_v1 = vsel %vm164_vm0, %v229_v56, 0.0  ;;  %v279_v46 = vrot.slane %v271_v35, %v534_v5 }
  0xeb   :  { %v245_v58 = vsel %vm164_vm0, %v214_v51, 0.0  ;;  %v253_v4 = vsel %vm164_vm0, %v231_v62, 0.0  ;;  %v286_v47 = vrot.slane %v272_v37, %v534_v5  ;;  %v296_v48 = vrot.slane %v288_v38, %v534_v5 }
  0xec   :  { %v244_v55 = vadd.f32 %v243_v54, %v242_v53  ;;  %v303_v49 = vrot.slane %v289_v39, %v534_v5  ;;  %v317_v50 = vrot.slane %v309_v42, %v534_v5  ;;  %v324_v51 = vrot.slane %v310_v43, %v534_v5 }
  0xed   :  { %v334_v52 = vrot.slane %v326_v44, %v534_v5  ;;  %v341_v53 = vrot.slane %v327_v45, %v534_v5  ;;  %v287_v56 = vcombine.low %v279_v46, %v286_v47 }
  0xee   :  { %v246_v59 = vadd.f32 %v245_v58, %v244_v55  ;;  %v304_v57 = vcombine.low %v296_v48, %v303_v49 }
  0xf0   :  { %v248_v61 = vadd.f32 %v247_v60, %v246_v59  ;;  %v325_v60 = vcombine.low %v317_v50, %v324_v51 }
  0xf2   :  { %v250_v0 = vadd.f32 %v249_v63, %v248_v61  ;;  %v342_v61 = vcombine.low %v334_v52, %v341_v53 }
  0xf4   :  { %v252_v2 = vadd.f32 %v251_v1, %v250_v0 }
  0xf6   :  { %v254_v6 = vadd.f32 %v253_v4, %v252_v2 }
  0xf8   :  { %255 = vadd.xlane.f32.xlu0 %v254_v6 }
 0x185   :  { %v256_v13 = vpop.xlane.xlu0 %255 }
 0x186   :  { %v257_v17 = vmul.f32 0.0009765625, %v256_v13 }
 0x188   :  { %v258_v21 = vadd.f32 1e-06, %v257_v17 }
 0x18a   :  { %373 = vrsqrt.f32 %v258_v21 }
 0x194   :  { %v374_v54 = vpop.eup %373 }
 0x195   :  { %v267_v55 = vrot.slane %v374_v54, %v549_v36 }
 0x197   :  { %v269_v58 = vmul.f32 %v267_v55, %v552_v40  ;;  %v270_v59 = vmul.f32 %v267_v55, %v554_v41 }
 0x199   :  { %v307_v62 = vmul.f32 %v287_v56, %v269_v58  ;;  %v308_v63 = vmul.f32 %v304_v57, %v270_v59 }
 0x19b   :  { %v345_v0 = vadd.f32 %v325_v60, %v307_v62  ;;  %v346_v1 = vadd.f32 %v342_v61, %v308_v63 }
 0x19d   :  { %347 = vst [vmem:[#allocation8] sm:$0xff] %v345_v0  ;;  %348 = vst [vmem:[#allocation8 + $0x8] sm:$0xff] %v346_v1 }
 0x19e   :  { %452 = shalt.err (!%p449_p0)
}
 0x19f   :  { %s453_s23 = scalar_lea.hbm %s606_s3, 256 }
 0x1a0   :  { %p454_p1 = scmp.ne.s32.totalorder %s606_s3, %s453_s23  ;;  %p457_p2 = scmp.lt.u32.totalorder %s453_s23, %s606_s3 }
 0x1a2   :  { %p459_p3 = pnand %p457_p2, %p454_p1 }
 0x1a4   :  { %462 = shalt.err (!%p459_p3)
}
 0x1a5   :  { %358 = dma.vmem_to_hbm [thread:$0]  %s356_s19, 256, %s606_s3, [#allocation4]  }
 0x1a6   :  { %467 = dma.done.wait [#allocation4], 256  }
 0x1a7   :  { %468 = vsyncadd [#allocation4], 4294967040 }
 0x1a8   :  { %362 = vsyncpa [#allocation3], 1 }
 0x1a9   :  { %363 = vsyncpa [#allocation6], 1 }
 0x1aa   :  { %364 = vsyncpa [#allocation4], 1 }

</bundles_post_ra>
